<compile_context>
chip_gen: v5e
topology: v5e:2x2
jax: 0.10.0
libtpu: 0.0.40
codegen_flags: <defaults>
</compile_context>

<pallas_src>
import functools
import math

import jax
import jax.numpy as jnp
from jax.experimental import pallas as pl
from jax.experimental.pallas import tpu as pltpu


def _round_up(n, m):
    return ((n + m - 1) // m) * m


def _pad2(a, rows, cols, dtype=jnp.float32):
    a = a.astype(dtype)
    return jnp.pad(a, ((0, rows - a.shape[0]), (0, cols - a.shape[1])))


# ----------------------------------------------------------------------------
# Pallas kernel: one batch tile per grid step, weights resident in VMEM.
# ----------------------------------------------------------------------------
def _linear_encoder_kernel(
    x_ref,            # (TB, Dp)  f32
    w1_ref, b1_ref,   # (Dp, Hp) mxu_dtype, (1, Hp) f32
    w2_ref, b2_ref,   # (Hp, Hp) mxu_dtype, (1, Hp) f32
    wh_ref, bh_ref,   # (Hp, 2*Lp) mxu_dtype, (1, 2*Lp) f32  -- fused heads
    eps_ref,          # (TB, Lp)  f32
    out_ref,          # (TB, 3*Lp)  ->  [z | mu | logvar]
    *, lp, mxu_dtype,
):
    def mm(a, w_ref):
        # Weights are pre-cast in the wrapper; only the small (TB, *)
        # activation is cast here.  Accumulate in f32 on the MXU.
        return jnp.dot(a.astype(mxu_dtype), w_ref[...],
                       preferred_element_type=jnp.float32)

    x = x_ref[...]

    # network: Linear -> ReLU -> (Dropout p=0 is identity) -> Linear -> ReLU
    h = jnp.maximum(mm(x, w1_ref) + b1_ref[...], 0.0)
    h = jnp.maximum(mm(h, w2_ref) + b2_ref[...], 0.0)

    # fused: final Linear of network folded into both heads -> one wide dot
    heads = mm(h, wh_ref) + bh_ref[...]            # (TB, 2*Lp) = [mu | logvar]
    mu = heads[:, :lp]
    lv = heads[:, lp:]

    # std = softplus(logvar) + 1e-6  (single-exp numerically stable form)
    std = jnp.maximum(lv, 0.0) + jnp.log1p(jnp.exp(-jnp.abs(lv))) + 1e-6
    z = mu + std * eps_ref[...]

    # Two 128-lane-aligned slice stores (no concatenate slab): [mu|logvar]
    # is already contiguous in `heads`.
    out_ref[:, lp:] = heads.astype(out_ref.dtype)
    out_ref[:, :lp] = z.astype(out_ref.dtype)


# ----------------------------------------------------------------------------
# One-time weight preparation: pad, fuse heads, pre-cast to MXU dtype.
# ----------------------------------------------------------------------------
def prepare_linear_encoder_weights(params, *, mxu_dtype=jnp.bfloat16):
    """Hoisted out of the per-call path: do this once per set of weights."""
    D, H = params["w1"].shape
    L = params["wmu"].shape[1]
    Dp, Hp, Lp = _round_up(D, 128), _round_up(H, 128), _round_up(L, 128)

    w1 = _pad2(params["w1"], Dp, Hp); b1 = _pad2(params["b1"], 1, Hp)
    w2 = _pad2(params["w2"], Hp, Hp); b2 = _pad2(params["b2"], 1, Hp)
    w3 = _pad2(params["w3"], Hp, Hp); b3 = _pad2(params["b3"], 1, Hp)
    wmu = _pad2(params["wmu"], Hp, Lp); bmu = _pad2(params["bmu"], 1, Lp)
    wlv = _pad2(params["wlv"], Hp, Lp); blv = _pad2(params["blv"], 1, Lp)

    # Fold the final activation-free linear into the concatenated heads (f32).
    w_heads = jnp.concatenate([wmu, wlv], axis=1)          # (Hp, 2*Lp)
    b_heads = jnp.concatenate([bmu, blv], axis=1)          # (1, 2*Lp)
    wh = w3 @ w_heads                                      # (Hp, 2*Lp)
    bh = b3 @ w_heads + b_heads                            # (1, 2*Lp)

    return {
        # matmul operands pre-cast to the MXU dtype (biases stay f32: they are
        # added to the f32 accumulators and are tiny)
        "w1": w1.astype(mxu_dtype), "b1": b1,
        "w2": w2.astype(mxu_dtype), "b2": b2,
        "wh": wh.astype(mxu_dtype), "bh": bh,
        "dims": (D, H, L, Dp, Hp, Lp),
        "mxu_dtype": mxu_dtype,
    }


# ----------------------------------------------------------------------------
# Per-call forward: pad x/eps, run the batch-tiled pallas_call, un-pad.
# ----------------------------------------------------------------------------
def linear_encoder_forward(x, prep, eps, *, block_batch=256,
                           out_dtype=jnp.float32):
    """x: (B, input_dim), eps: (B, latent_dim) standard-normal noise.

    block_batch: batch tile size; use 256/512 multiples on v6e/v7x, 128 on
    v5e, and sweep upward within the VMEM budget.  out_dtype=jnp.bfloat16
    halves the output HBM stream if downstream consumers allow it.
    """
    D, H, L, Dp, Hp, Lp = prep["dims"]
    mxu_dtype = prep["mxu_dtype"]
    B = x.shape[0]

    TB = min(block_batch, _round_up(B, 8))
    Bp = _round_up(B, TB)

    xp = _pad2(x, Bp, Dp)
    epsp = _pad2(eps, Bp, Lp)
    w1, b1 = prep["w1"], prep["b1"]
    w2, b2 = prep["w2"], prep["b2"]
    wh, bh = prep["wh"], prep["bh"]

    # Explicit VMEM budget: resident weights (1 buffer each) + f32 biases +
    # double-buffered streamed tiles, with 25% headroom.  Never below the
    # 32 MiB scoped default, capped at 128 MiB.
    w_bytes = (Dp * Hp + Hp * Hp + Hp * 2 * Lp) * jnp.dtype(mxu_dtype).itemsize
    b_bytes = (Hp + Hp + 2 * Lp) * 4
    tile_bytes = 2 * (TB * Dp + TB * Lp) * 4 \
        + 2 * (TB * 3 * Lp) * jnp.dtype(out_dtype).itemsize
    need = int(1.25 * (w_bytes + b_bytes + tile_bytes))
    vmem_limit = min(128 * 1024 * 1024, max(32 * 1024 * 1024, need))

    grid = (Bp // TB,)
    kernel = functools.partial(_linear_encoder_kernel, lp=Lp,
                               mxu_dtype=mxu_dtype)

    def run(single_buffer_weights):
        if single_buffer_weights:
            # Constant block index -> one VMEM buffer is enough (halves the
            # resident-weight VMEM footprint vs default double buffering).
            def const_spec(shape):
                return pl.BlockSpec(shape, lambda i: (0, 0),
                                    pipeline_mode=pl.Buffered(1))
        else:
            def const_spec(shape):
                return pl.BlockSpec(shape, lambda i: (0, 0))

        return pl.pallas_call(
            kernel,
            out_shape=jax.ShapeDtypeStruct((Bp, 3 * Lp), out_dtype),
            grid_spec=pltpu.PrefetchScalarGridSpec(
                num_scalar_prefetch=0,
                grid=grid,
                in_specs=[
                    pl.BlockSpec((TB, Dp), lambda i: (i, 0)),      # x tile
                    const_spec((Dp, Hp)),                          # w1
                    const_spec((1, Hp)),                           # b1
                    const_spec((Hp, Hp)),                          # w2
                    const_spec((1, Hp)),                           # b2
                    const_spec((Hp, 2 * Lp)),                      # fused W
                    const_spec((1, 2 * Lp)),                       # fused b
                    pl.BlockSpec((TB, Lp), lambda i: (i, 0)),      # eps tile
                ],
                out_specs=pl.BlockSpec((TB, 3 * Lp), lambda i: (i, 0)),
            ),
            compiler_params=pltpu.CompilerParams(
                dimension_semantics=("parallel",),   # batch tiles across TCs
                vmem_limit_bytes=vmem_limit,
            ),
        )(xp, w1, b1, w2, b2, wh, bh, epsp)

    try:
        out = run(True)
    except Exception:
        # Fallback for jax builds without pipeline_mode / Buffered(1) support
        # on top-level pallas_call BlockSpecs: default double buffering.
        out = run(False)

    z = out[:B, :L].astype(jnp.float32)
    mu = out[:B, Lp:Lp + L].astype(jnp.float32)
    lv = out[:B, 2 * Lp:2 * Lp + L].astype(jnp.float32)
    return z, mu, lv


# ----------------------------------------------------------------------------
# Deterministic parameter init (Xavier uniform weights, zero biases)
# ----------------------------------------------------------------------------
def _xavier_uniform(key, fan_in, fan_out):
    bound = math.sqrt(6.0 / (fan_in + fan_out))
    # stored as (in, out) so the kernel does x @ W (== PyTorch x @ W.T)
    return jax.random.uniform(
        key, (fan_in, fan_out), dtype=jnp.float32, minval=-bound, maxval=bound
    )


def init_linear_encoder_params(key, input_dim, hidden_dim, latent_dim):
    ks = jax.random.split(key, 5)
    return {
        "w1": _xavier_uniform(ks[0], input_dim, hidden_dim),
        "b1": jnp.zeros((1, hidden_dim), jnp.float32),
        "w2": _xavier_uniform(ks[1], hidden_dim, hidden_dim),
        "b2": jnp.zeros((1, hidden_dim), jnp.float32),
        "w3": _xavier_uniform(ks[2], hidden_dim, hidden_dim),
        "b3": jnp.zeros((1, hidden_dim), jnp.float32),
        "wmu": _xavier_uniform(ks[3], hidden_dim, latent_dim),
        "bmu": jnp.zeros((1, latent_dim), jnp.float32),
        "wlv": _xavier_uniform(ks[4], hidden_dim, latent_dim),
        "blv": jnp.zeros((1, latent_dim), jnp.float32),
    }


# ----------------------------------------------------------------------------
# Pure-JAX reference (unfused, unpadded) for a sanity check
# ----------------------------------------------------------------------------
def _reference_forward(x, p, eps):
    h = jnp.maximum(x @ p["w1"] + p["b1"], 0.0)
    h = jnp.maximum(h @ p["w2"] + p["b2"], 0.0)
    h = h @ p["w3"] + p["b3"]
    mu = h @ p["wmu"] + p["bmu"]
    lv = h @ p["wlv"] + p["blv"]
    std = jax.nn.softplus(lv) + 1e-6
    return mu + std * eps, mu, lv


if __name__ == "__main__":
    B, INPUT_DIM, HIDDEN_DIM, LATENT_DIM = 24, 32, 32, 16

    key = jax.random.PRNGKey(0)
    k_x, k_params, k_eps = jax.random.split(key, 3)

    x = jax.random.normal(k_x, (B, INPUT_DIM), dtype=jnp.float32)
    params = init_linear_encoder_params(k_params, INPUT_DIM, HIDDEN_DIM, LATENT_DIM)
    # TODO(synk): reparameterization noise (Normal.rsample) is drawn outside
    # the kernel and passed in as eps; pltpu.prng_seed + pltpu.stateful_normal
    # in-kernel would drop one HBM input stream (biggest relative win on v5e).
    eps = jax.random.normal(k_eps, (B, LATENT_DIM), dtype=jnp.float32)

    z_ref, mu_ref, lv_ref = _reference_forward(x, params, eps)

    # f32 debug path: exact (tight tolerance).  block_batch=8 -> 3-step grid.
    prep_f32 = prepare_linear_encoder_weights(params, mxu_dtype=jnp.float32)
    z, mu, logvar = linear_encoder_forward(x, prep_f32, eps, block_batch=8)
    jax.block_until_ready((z, mu, logvar))
    assert jnp.allclose(z, z_ref, atol=2e-5), "z mismatch (f32)"
    assert jnp.allclose(mu, mu_ref, atol=2e-5), "mu mismatch (f32)"
    assert jnp.allclose(logvar, lv_ref, atol=2e-5), "logvar mismatch (f32)"

    # bf16 MXU-operand path (default / production on v6e+): loose tolerance.
    prep_bf16 = prepare_linear_encoder_weights(params)   # mxu_dtype=bfloat16
    z_b, mu_b, lv_b = linear_encoder_forward(x, prep_bf16, eps, block_batch=8)
    jax.block_until_ready((z_b, mu_b, lv_b))
    assert jnp.allclose(z_b, z_ref, atol=5e-2, rtol=5e-2), "z mismatch (bf16)"
    assert jnp.allclose(mu_b, mu_ref, atol=5e-2, rtol=5e-2), "mu mismatch (bf16)"
    assert jnp.allclose(lv_b, lv_ref, atol=5e-2, rtol=5e-2), "logvar mismatch (bf16)"

    print("KERNEL_OK")
</pallas_src>

<mosaic_0001>
module attributes {stable_mosaic.version = 11 : i64} {
  func.func @_linear_encoder_kernel(%arg0: i32, %arg1: memref<8x128xf32, #tpu.memory_space<vmem>>, %arg2: memref<128x128xf32, #tpu.memory_space<vmem>>, %arg3: memref<1x128xf32, #tpu.memory_space<vmem>>, %arg4: memref<128x128xf32, #tpu.memory_space<vmem>>, %arg5: memref<1x128xf32, #tpu.memory_space<vmem>>, %arg6: memref<128x256xf32, #tpu.memory_space<vmem>>, %arg7: memref<1x256xf32, #tpu.memory_space<vmem>>, %arg8: memref<8x128xf32, #tpu.memory_space<vmem>>, %arg9: memref<8x384xf32, #tpu.memory_space<vmem>>) attributes {dimension_semantics = [#tpu.dimension_semantics<parallel>], iteration_bounds = array<i64: 3>, scalar_prefetch = 0 : i64, scratch_operands = 0 : i64, tpu.core_type = #tpu.core_type<tc>, window_params = [{transform_indices = @transform_0, window_bounds = array<i64: 8, 128>}, {pipeline_mode = #tpu.pipeline_mode<synchronous>, transform_indices = @transform_1, window_bounds = array<i64: 128, 128>}, {pipeline_mode = #tpu.pipeline_mode<synchronous>, transform_indices = @transform_2, window_bounds = array<i64: 1, 128>}, {pipeline_mode = #tpu.pipeline_mode<synchronous>, transform_indices = @transform_3, window_bounds = array<i64: 128, 128>}, {pipeline_mode = #tpu.pipeline_mode<synchronous>, transform_indices = @transform_4, window_bounds = array<i64: 1, 128>}, {pipeline_mode = #tpu.pipeline_mode<synchronous>, transform_indices = @transform_5, window_bounds = array<i64: 128, 256>}, {pipeline_mode = #tpu.pipeline_mode<synchronous>, transform_indices = @transform_6, window_bounds = array<i64: 1, 256>}, {transform_indices = @transform_7, window_bounds = array<i64: 8, 128>}, {transform_indices = @transform_8, window_bounds = array<i64: 8, 384>}]} {
    %c0 = arith.constant 0 : index
    %c0_0 = arith.constant 0 : index
    %0 = vector.load %arg1[%c0, %c0_0] : memref<8x128xf32, #tpu.memory_space<vmem>>, vector<8x128xf32>
    %c0_1 = arith.constant 0 : index
    %c0_2 = arith.constant 0 : index
    %1 = vector.load %arg2[%c0_1, %c0_2] : memref<128x128xf32, #tpu.memory_space<vmem>>, vector<128x128xf32>
    %cst = arith.constant dense<0.000000e+00> : vector<8x128xf32>
    %2 = tpu.matmul %0, %1, %cst {dimension_numbers = #tpu.dot_dimension_numbers<[1], [0], [0], [1], [0, 0, 1, 1], [], []>} : vector<8x128xf32>, vector<128x128xf32>, vector<8x128xf32> -> vector<8x128xf32>
    %c0_3 = arith.constant 0 : index
    %c0_4 = arith.constant 0 : index
    %3 = vector.load %arg3[%c0_3, %c0_4] : memref<1x128xf32, #tpu.memory_space<vmem>>, vector<1x128xf32>
    %4 = vector.broadcast %3 : vector<1x128xf32> to vector<8x128xf32>
    %5 = arith.addf %2, %4 : vector<8x128xf32>
    %cst_5 = arith.constant 0.000000e+00 : f32
    %6 = vector.broadcast %cst_5 : f32 to vector<8x128xf32>
    %7 = arith.maximumf %5, %6 : vector<8x128xf32>
    %c0_6 = arith.constant 0 : index
    %c0_7 = arith.constant 0 : index
    %8 = vector.load %arg4[%c0_6, %c0_7] : memref<128x128xf32, #tpu.memory_space<vmem>>, vector<128x128xf32>
    %cst_8 = arith.constant dense<0.000000e+00> : vector<8x128xf32>
    %9 = tpu.matmul %7, %8, %cst_8 {dimension_numbers = #tpu.dot_dimension_numbers<[1], [0], [0], [1], [0, 0, 1, 1], [], []>} : vector<8x128xf32>, vector<128x128xf32>, vector<8x128xf32> -> vector<8x128xf32>
    %c0_9 = arith.constant 0 : index
    %c0_10 = arith.constant 0 : index
    %10 = vector.load %arg5[%c0_9, %c0_10] : memref<1x128xf32, #tpu.memory_space<vmem>>, vector<1x128xf32>
    %11 = vector.broadcast %10 : vector<1x128xf32> to vector<8x128xf32>
    %12 = arith.addf %9, %11 : vector<8x128xf32>
    %cst_11 = arith.constant 0.000000e+00 : f32
    %13 = vector.broadcast %cst_11 : f32 to vector<8x128xf32>
    %14 = arith.maximumf %12, %13 : vector<8x128xf32>
    %c0_12 = arith.constant 0 : index
    %c0_13 = arith.constant 0 : index
    %15 = vector.load %arg6[%c0_12, %c0_13] : memref<128x256xf32, #tpu.memory_space<vmem>>, vector<128x256xf32>
    %cst_14 = arith.constant dense<0.000000e+00> : vector<8x256xf32>
    %16 = tpu.matmul %14, %15, %cst_14 {dimension_numbers = #tpu.dot_dimension_numbers<[1], [0], [0], [1], [0, 0, 1, 1], [], []>} : vector<8x128xf32>, vector<128x256xf32>, vector<8x256xf32> -> vector<8x256xf32>
    %c0_15 = arith.constant 0 : index
    %c0_16 = arith.constant 0 : index
    %17 = vector.load %arg7[%c0_15, %c0_16] : memref<1x256xf32, #tpu.memory_space<vmem>>, vector<1x256xf32>
    %18 = vector.broadcast %17 : vector<1x256xf32> to vector<8x256xf32>
    %19 = arith.addf %16, %18 : vector<8x256xf32>
    %20 = vector.extract_strided_slice %19 {offsets = [0, 0], sizes = [8, 128], strides = [1, 1]} : vector<8x256xf32> to vector<8x128xf32>
    %21 = vector.extract_strided_slice %19 {offsets = [0, 128], sizes = [8, 128], strides = [1, 1]} : vector<8x256xf32> to vector<8x128xf32>
    %cst_17 = arith.constant 0.000000e+00 : f32
    %22 = vector.broadcast %cst_17 : f32 to vector<8x128xf32>
    %23 = arith.maximumf %21, %22 : vector<8x128xf32>
    %24 = math.absf %21 : vector<8x128xf32>
    %cst_18 = arith.constant 0.000000e+00 : f32
    %25 = vector.broadcast %cst_18 : f32 to vector<8x128xf32>
    %26 = arith.subf %25, %24 : vector<8x128xf32>
    %27 = math.exp %26 : vector<8x128xf32>
    %28 = math.log1p %27 : vector<8x128xf32>
    %29 = arith.addf %23, %28 : vector<8x128xf32>
    %cst_19 = arith.constant 9.99999997E-7 : f32
    %30 = vector.broadcast %cst_19 : f32 to vector<8x128xf32>
    %31 = arith.addf %29, %30 : vector<8x128xf32>
    %c0_20 = arith.constant 0 : index
    %c0_21 = arith.constant 0 : index
    %32 = vector.load %arg8[%c0_20, %c0_21] : memref<8x128xf32, #tpu.memory_space<vmem>>, vector<8x128xf32>
    %33 = arith.mulf %31, %32 : vector<8x128xf32>
    %34 = arith.addf %20, %33 : vector<8x128xf32>
    %c0_22 = arith.constant 0 : index
    %c128 = arith.constant 128 : index
    %35 = vector.load %arg9[%c0_22, %c128] : memref<8x384xf32, #tpu.memory_space<vmem>>, vector<8x256xf32>
    tpu.vector_store %arg9[%c0_22, %c128], %19 {strides = array<i32>} : memref<8x384xf32, #tpu.memory_space<vmem>>, vector<8x256xf32>,
    %c0_23 = arith.constant 0 : index
    %c0_24 = arith.constant 0 : index
    %36 = vector.load %arg9[%c0_23, %c0_24] : memref<8x384xf32, #tpu.memory_space<vmem>>, vector<8x128xf32>
    tpu.vector_store %arg9[%c0_23, %c0_24], %34 {strides = array<i32>} : memref<8x384xf32, #tpu.memory_space<vmem>>, vector<8x128xf32>,
    return
  }
  func.func @transform_0(%arg0: i32) -> (i32, i32) {
    %c0_i32 = arith.constant 0 : i32
    %c0_i32_0 = arith.constant 0 : i32
    return %arg0, %c0_i32 : i32, i32
  }
  func.func @transform_1(%arg0: i32) -> (i32, i32) {
    %c0_i32 = arith.constant 0 : i32
    %c0_i32_0 = arith.constant 0 : i32
    %c0_i32_1 = arith.constant 0 : i32
    return %c0_i32, %c0_i32_0 : i32, i32
  }
  func.func @transform_2(%arg0: i32) -> (i32, i32) {
    %c0_i32 = arith.constant 0 : i32
    %c0_i32_0 = arith.constant 0 : i32
    %c0_i32_1 = arith.constant 0 : i32
    return %c0_i32, %c0_i32_0 : i32, i32
  }
  func.func @transform_3(%arg0: i32) -> (i32, i32) {
    %c0_i32 = arith.constant 0 : i32
    %c0_i32_0 = arith.constant 0 : i32
    %c0_i32_1 = arith.constant 0 : i32
    return %c0_i32, %c0_i32_0 : i32, i32
  }
  func.func @transform_4(%arg0: i32) -> (i32, i32) {
    %c0_i32 = arith.constant 0 : i32
    %c0_i32_0 = arith.constant 0 : i32
    %c0_i32_1 = arith.constant 0 : i32
    return %c0_i32, %c0_i32_0 : i32, i32
  }
  func.func @transform_5(%arg0: i32) -> (i32, i32) {
    %c0_i32 = arith.constant 0 : i32
    %c0_i32_0 = arith.constant 0 : i32
    %c0_i32_1 = arith.constant 0 : i32
    return %c0_i32, %c0_i32_0 : i32, i32
  }
  func.func @transform_6(%arg0: i32) -> (i32, i32) {
    %c0_i32 = arith.constant 0 : i32
    %c0_i32_0 = arith.constant 0 : i32
    %c0_i32_1 = arith.constant 0 : i32
    return %c0_i32, %c0_i32_0 : i32, i32
  }
  func.func @transform_7(%arg0: i32) -> (i32, i32) {
    %c0_i32 = arith.constant 0 : i32
    %c0_i32_0 = arith.constant 0 : i32
    return %arg0, %c0_i32 : i32, i32
  }
  func.func @transform_8(%arg0: i32) -> (i32, i32) {
    %c0_i32 = arith.constant 0 : i32
    %c0_i32_0 = arith.constant 0 : i32
    return %arg0, %c0_i32 : i32, i32
  }
}

module attributes {stable_mosaic.version = 11 : i64} {
  func.func @_linear_encoder_kernel(%arg0: i32, %arg1: memref<8x128xf32, #tpu.memory_space<vmem>>, %arg2: memref<128x128xf32, #tpu.memory_space<vmem>>, %arg3: memref<1x128xf32, #tpu.memory_space<vmem>>, %arg4: memref<128x128xf32, #tpu.memory_space<vmem>>, %arg5: memref<1x128xf32, #tpu.memory_space<vmem>>, %arg6: memref<128x256xf32, #tpu.memory_space<vmem>>, %arg7: memref<1x256xf32, #tpu.memory_space<vmem>>, %arg8: memref<8x128xf32, #tpu.memory_space<vmem>>, %arg9: memref<8x384xf32, #tpu.memory_space<vmem>>) attributes {dimension_semantics = [#tpu.dimension_semantics<parallel>], iteration_bounds = array<i64: 3>, scalar_prefetch = 0 : i64, scratch_operands = 0 : i64, tpu.core_type = #tpu.core_type<tc>, window_params = [{transform_indices = @transform_0, window_bounds = array<i64: 8, 128>}, {pipeline_mode = #tpu.pipeline_mode<synchronous>, transform_indices = @transform_1, window_bounds = array<i64: 128, 128>}, {pipeline_mode = #tpu.pipeline_mode<synchronous>, transform_indices = @transform_2, window_bounds = array<i64: 1, 128>}, {pipeline_mode = #tpu.pipeline_mode<synchronous>, transform_indices = @transform_3, window_bounds = array<i64: 128, 128>}, {pipeline_mode = #tpu.pipeline_mode<synchronous>, transform_indices = @transform_4, window_bounds = array<i64: 1, 128>}, {pipeline_mode = #tpu.pipeline_mode<synchronous>, transform_indices = @transform_5, window_bounds = array<i64: 128, 256>}, {pipeline_mode = #tpu.pipeline_mode<synchronous>, transform_indices = @transform_6, window_bounds = array<i64: 1, 256>}, {transform_indices = @transform_7, window_bounds = array<i64: 8, 128>}, {transform_indices = @transform_8, window_bounds = array<i64: 8, 384>}]} {
    %c0 = arith.constant 0 : index
    %c0_0 = arith.constant 0 : index
    %0 = vector.load %arg1[%c0, %c0_0] : memref<8x128xf32, #tpu.memory_space<vmem>>, vector<8x128xf32>
    %c0_1 = arith.constant 0 : index
    %c0_2 = arith.constant 0 : index
    %1 = vector.load %arg2[%c0_1, %c0_2] : memref<128x128xf32, #tpu.memory_space<vmem>>, vector<128x128xf32>
    %cst = arith.constant dense<0.000000e+00> : vector<8x128xf32>
    %2 = tpu.matmul %0, %1, %cst {dimension_numbers = #tpu.dot_dimension_numbers<[1], [0], [0], [1], [0, 0, 1, 1], [], []>} : vector<8x128xf32>, vector<128x128xf32>, vector<8x128xf32> -> vector<8x128xf32>
    %c0_3 = arith.constant 0 : index
    %c0_4 = arith.constant 0 : index
    %3 = vector.load %arg3[%c0_3, %c0_4] : memref<1x128xf32, #tpu.memory_space<vmem>>, vector<1x128xf32>
    %4 = vector.broadcast %3 : vector<1x128xf32> to vector<8x128xf32>
    %5 = arith.addf %2, %4 : vector<8x128xf32>
    %cst_5 = arith.constant 0.000000e+00 : f32
    %6 = vector.broadcast %cst_5 : f32 to vector<8x128xf32>
    %7 = arith.maximumf %5, %6 : vector<8x128xf32>
    %c0_6 = arith.constant 0 : index
    %c0_7 = arith.constant 0 : index
    %8 = vector.load %arg4[%c0_6, %c0_7] : memref<128x128xf32, #tpu.memory_space<vmem>>, vector<128x128xf32>
    %cst_8 = arith.constant dense<0.000000e+00> : vector<8x128xf32>
    %9 = tpu.matmul %7, %8, %cst_8 {dimension_numbers = #tpu.dot_dimension_numbers<[1], [0], [0], [1], [0, 0, 1, 1], [], []>} : vector<8x128xf32>, vector<128x128xf32>, vector<8x128xf32> -> vector<8x128xf32>
    %c0_9 = arith.constant 0 : index
    %c0_10 = arith.constant 0 : index
    %10 = vector.load %arg5[%c0_9, %c0_10] : memref<1x128xf32, #tpu.memory_space<vmem>>, vector<1x128xf32>
    %11 = vector.broadcast %10 : vector<1x128xf32> to vector<8x128xf32>
    %12 = arith.addf %9, %11 : vector<8x128xf32>
    %cst_11 = arith.constant 0.000000e+00 : f32
    %13 = vector.broadcast %cst_11 : f32 to vector<8x128xf32>
    %14 = arith.maximumf %12, %13 : vector<8x128xf32>
    %c0_12 = arith.constant 0 : index
    %c0_13 = arith.constant 0 : index
    %15 = vector.load %arg6[%c0_12, %c0_13] : memref<128x256xf32, #tpu.memory_space<vmem>>, vector<128x256xf32>
    %cst_14 = arith.constant dense<0.000000e+00> : vector<8x256xf32>
    %16 = tpu.matmul %14, %15, %cst_14 {dimension_numbers = #tpu.dot_dimension_numbers<[1], [0], [0], [1], [0, 0, 1, 1], [], []>} : vector<8x128xf32>, vector<128x256xf32>, vector<8x256xf32> -> vector<8x256xf32>
    %c0_15 = arith.constant 0 : index
    %c0_16 = arith.constant 0 : index
    %17 = vector.load %arg7[%c0_15, %c0_16] : memref<1x256xf32, #tpu.memory_space<vmem>>, vector<1x256xf32>
    %18 = vector.broadcast %17 : vector<1x256xf32> to vector<8x256xf32>
    %19 = arith.addf %16, %18 : vector<8x256xf32>
    %20 = vector.extract_strided_slice %19 {offsets = [0, 0], sizes = [8, 128], strides = [1, 1]} : vector<8x256xf32> to vector<8x128xf32>
    %21 = vector.extract_strided_slice %19 {offsets = [0, 128], sizes = [8, 128], strides = [1, 1]} : vector<8x256xf32> to vector<8x128xf32>
    %cst_17 = arith.constant 0.000000e+00 : f32
    %22 = vector.broadcast %cst_17 : f32 to vector<8x128xf32>
    %23 = arith.maximumf %21, %22 : vector<8x128xf32>
    %24 = math.absf %21 : vector<8x128xf32>
    %cst_18 = arith.constant 0.000000e+00 : f32
    %25 = vector.broadcast %cst_18 : f32 to vector<8x128xf32>
    %26 = arith.subf %25, %24 : vector<8x128xf32>
    %27 = math.exp %26 : vector<8x128xf32>
    %28 = math.log1p %27 : vector<8x128xf32>
    %29 = arith.addf %23, %28 : vector<8x128xf32>
    %cst_19 = arith.constant 9.99999997E-7 : f32
    %30 = vector.broadcast %cst_19 : f32 to vector<8x128xf32>
    %31 = arith.addf %29, %30 : vector<8x128xf32>
    %c0_20 = arith.constant 0 : index
    %c0_21 = arith.constant 0 : index
    %32 = vector.load %arg8[%c0_20, %c0_21] : memref<8x128xf32, #tpu.memory_space<vmem>>, vector<8x128xf32>
    %33 = arith.mulf %31, %32 : vector<8x128xf32>
    %34 = arith.addf %20, %33 : vector<8x128xf32>
    %c0_22 = arith.constant 0 : index
    %c128 = arith.constant 128 : index
    %35 = vector.load %arg9[%c0_22, %c128] : memref<8x384xf32, #tpu.memory_space<vmem>>, vector<8x256xf32>
    tpu.vector_store %arg9[%c0_22, %c128], %19 {strides = array<i32>} : memref<8x384xf32, #tpu.memory_space<vmem>>, vector<8x256xf32>,
    %c0_23 = arith.constant 0 : index
    %c0_24 = arith.constant 0 : index
    %36 = vector.load %arg9[%c0_23, %c0_24] : memref<8x384xf32, #tpu.memory_space<vmem>>, vector<8x128xf32>
    tpu.vector_store %arg9[%c0_23, %c0_24], %34 {strides = array<i32>} : memref<8x384xf32, #tpu.memory_space<vmem>>, vector<8x128xf32>,
    return
  }
  func.func @transform_0(%arg0: i32) -> (i32, i32) {
    %c0_i32 = arith.constant 0 : i32
    %c0_i32_0 = arith.constant 0 : i32
    return %arg0, %c0_i32 : i32, i32
  }
  func.func @transform_1(%arg0: i32) -> (i32, i32) {
    %c0_i32 = arith.constant 0 : i32
    %c0_i32_0 = arith.constant 0 : i32
    %c0_i32_1 = arith.constant 0 : i32
    return %c0_i32, %c0_i32_0 : i32, i32
  }
  func.func @transform_2(%arg0: i32) -> (i32, i32) {
    %c0_i32 = arith.constant 0 : i32
    %c0_i32_0 = arith.constant 0 : i32
    %c0_i32_1 = arith.constant 0 : i32
    return %c0_i32, %c0_i32_0 : i32, i32
  }
  func.func @transform_3(%arg0: i32) -> (i32, i32) {
    %c0_i32 = arith.constant 0 : i32
    %c0_i32_0 = arith.constant 0 : i32
    %c0_i32_1 = arith.constant 0 : i32
    return %c0_i32, %c0_i32_0 : i32, i32
  }
  func.func @transform_4(%arg0: i32) -> (i32, i32) {
    %c0_i32 = arith.constant 0 : i32
    %c0_i32_0 = arith.constant 0 : i32
    %c0_i32_1 = arith.constant 0 : i32
    return %c0_i32, %c0_i32_0 : i32, i32
  }
  func.func @transform_5(%arg0: i32) -> (i32, i32) {
    %c0_i32 = arith.constant 0 : i32
    %c0_i32_0 = arith.constant 0 : i32
    %c0_i32_1 = arith.constant 0 : i32
    return %c0_i32, %c0_i32_0 : i32, i32
  }
  func.func @transform_6(%arg0: i32) -> (i32, i32) {
    %c0_i32 = arith.constant 0 : i32
    %c0_i32_0 = arith.constant 0 : i32
    %c0_i32_1 = arith.constant 0 : i32
    return %c0_i32, %c0_i32_0 : i32, i32
  }
  func.func @transform_7(%arg0: i32) -> (i32, i32) {
    %c0_i32 = arith.constant 0 : i32
    %c0_i32_0 = arith.constant 0 : i32
    return %arg0, %c0_i32 : i32, i32
  }
  func.func @transform_8(%arg0: i32) -> (i32, i32) {
    %c0_i32 = arith.constant 0 : i32
    %c0_i32_0 = arith.constant 0 : i32
    return %arg0, %c0_i32 : i32, i32
  }
}

</mosaic_0001>

<bundles_post_ra>
// kernel: tpu_custom_call.1
= control target key start
LH: loop header
LB: loop body
LE: loop exit
PB: predicated region body
PF: predicated region fallthrough
CT: control target
= control target key end

     0   :  { %s1406_s0 = inlined_call_operand.hbm [shape: f32[24,128], index: 0, kind: input, shape index: {}]   ;;  %s1407_s1 = inlined_call_operand.hbm [shape: f32[128,128], index: 1, kind: input, shape index: {}]   ;;  %s1408_s2 = inlined_call_operand.vmem [shape: f32[1,128], index: 2, kind: input, shape index: {}]   ;;  %s1409_s3 = inlined_call_operand.hbm [shape: f32[128,128], index: 3, kind: input, shape index: {}]   ;;  %s1410_s4 = inlined_call_operand.hbm [shape: f32[1,128], index: 4, kind: input, shape index: {}]   ;;  %s1411_s5 = inlined_call_operand.hbm [shape: f32[128,256], index: 5, kind: input, shape index: {}]   ;;  %s1412_s6 = inlined_call_operand.vmem [shape: f32[1,256], index: 6, kind: input, shape index: {}]   ;;  %s1413_s7 = inlined_call_operand.hbm [shape: f32[24,128], index: 7, kind: input, shape index: {}]   ;;  %s1414_s8 = inlined_call_operand.hbm [shape: f32[24,384], index: 8, kind: output, shape index: {}]  }
   0x1   :  { %1418 = sst [smem:[#allocation22_spill]] %s1407_s1 }
   0x2   :  { %1419 = sst [smem:[#allocation23_spill]] %s1409_s3 }
   0x3   :  { %1420 = sst [smem:[#allocation24_spill]] %s1410_s4 }
   0x4   :  { %1421 = sst [smem:[#allocation25_spill]] %s1411_s5 }
   0x5   :  { %13 = vsyncpa [#allocation3], 0 }
   0x6   :  { %15 = vsyncpa [#allocation3 + $0x1], 0 }
   0x7   :  { %16 = vsyncpa [#allocation6], 0 }
   0x8   :  { %17 = vsyncpa [#allocation9], 0 }
   0x9   :  { %18 = vsyncpa [#allocation12], 0 }
   0xa   :  { %20 = vsyncpa [#allocation12 + $0x1], 0 }
   0xb   :  { %21 = vsyncpa [#allocation4], 0 }
   0xc   :  { %23 = vsyncpa [#allocation4 + $0x1], 0  ;;  %s1195_s27 = smov 0   ;;  %s1197_s28 = smov 0  }
   0xd   :  { %s1199_s29 = smov 0   ;;  %s1201_s30 = smov 0  }
   0xe LB: > { %1422 = sst [smem:[#allocation19_spill]] %s1136_s29  ;;  %s1219_s12 = sadd.s32 4294967295, %s1140_s30   ;;  %s1140_s30 = sphi %s1201_s30, %s1436_s30   ;;  %s1136_s29 = sphi %s1199_s29, %s1438_s29   ;;  %s1132_s28 = sphi %s1197_s28, %s1440_s28   ;;  %s1128_s27 = sphi %s1195_s27, %s1439_s27  }
   0xf   : > { %s1423_s1 = sld [smem:[#allocation22_spill]]  ;;  %p758_p0 = scmp.ge.s32.totalorder %s1140_s30, 1 }
  0x10   : > { %p50_p1 = scmp.eq.s32.totalorder %s1219_s12, 0  ;;  %p238_p2 = scmp.lt.s32.totalorder %s1140_s30, 4 }
  0x11   : > { %s1142_s14 = smov [#allocation5]   ;;  %s1425_s4 = sld [smem:[#allocation24_spill]] }
  0x12   : > { %p1224_p3 = pnand %p758_p0, %p238_p2  ;;  %s251_s15 = sshll.u32 %s1142_s14, 4  ;;  %s252_s15 = int_to_ptr.vmem [resolvable:$true] %s251_s15 }
  0x13   : > { %s1427_s3 = sld [smem:[#allocation23_spill]]  ;;  %s1143_s23 = smov [#allocation8]  }
  0x14   : > { %p802_p4 = pneg %p1224_p3  ;;  %s283_s24 = sshll.u32 %s1143_s23, 4  ;;  %s284_s24 = int_to_ptr.vmem [resolvable:$true] %s283_s24 }
  0x15   : > { %s249_s11 = sshll.u32 %s1423_s1, 4  ;;  %s1144_s25 = smov 128   ;;  %s250_s11 = int_to_ptr.hbm [resolvable:$true] %s249_s11 }
  0x16   : > { %p1235_p5 = pnand %p802_p4, %p50_p1  ;;  %s1145_s26 = smov 8  }
  0x17   : > { %s281_s18 = sshll.u32 %s1425_s4, 4  ;;  %s1428_s5 = sld [smem:[#allocation25_spill]]  ;;  %s282_s18 = int_to_ptr.hbm [resolvable:$true] %s281_s18 }
  0x18   : > { %805 = dma.hbm_to_vmem [thread:$0]  (!%p1235_p5), %s250_s11, 2048, %s252_s15, [#allocation6], %s1144_s25, %s1144_s25, %s1145_s26  }
  0x19   : > { %s266_s22 = sshll.u32 %s1427_s3, 4  ;;  %s1146_s16 = smov [#allocation7]   ;;  %s267_s22 = int_to_ptr.hbm [resolvable:$true] %s266_s22 }
  0x1a   : > { %811 = dma.hbm_to_vmem [thread:$0]  (!%p1235_p5), %s282_s18, 16, %s284_s24, [#allocation9]  }
  0x1b   : > { %s268_s17 = sshll.u32 %s1146_s16, 4  ;;  %s1147_s11 = smov [#allocation10]   ;;  %s269_s17 = int_to_ptr.vmem [resolvable:$true] %s268_s17 }
  0x1c   : > { %808 = dma.hbm_to_vmem [thread:$0]  (!%p1235_p5), %s267_s22, 2048, %s269_s17, [#allocation6], %s1144_s25, %s1144_s25, %s1145_s26  }
  0x1d   : > { %s292_s14 = sshll.u32 %s1428_s5, 4  ;;  %s294_s15 = sshll.u32 %s1147_s11, 4  ;;  %s293_s14 = int_to_ptr.hbm [resolvable:$true] %s292_s14  ;;  %s295_s15 = int_to_ptr.vmem [resolvable:$true] %s294_s15 }
  0x1e   : > { %s1148_s18 = smov 256   ;;  %s1149_s20 = smov 16  }
  0x1f   : > { %814 = dma.hbm_to_vmem [thread:$0]  (!%p1235_p5), %s293_s14, 4096, %s295_s15, [#allocation9], %s1148_s18, %s1148_s18, %s1149_s20  }
  0x20   : > { %s757_s21 = sadd.s32 4294967294, %s1140_s30   ;;  %s1255_s23 = sadd.s32 1, %s1140_s30  }
  0x21   : > { %1429 = sst [smem:[#allocation20_spill]] %s1255_s23  ;;  %s33_s24 = ssub.s32 %s1140_s30, %s1255_s23 }
  0x22   : > { %s36_s9 = sadd.s32 1, %s1136_s29  ;;  %p34_p6 = scmp.eq.s32.totalorder %s33_s24, 0 }
  0x23   : > { %p43_p7 = scmp.ne.s32.totalorder %s1136_s29, %s1132_s28  ;;  %p44_p8 = scmp.eq.s32.totalorder %s1140_s30, 0 }
  0x24   : > { %p49_p9 = scmp.ne.s32.totalorder %s1132_s28, %s1128_s27  ;;  %p225_p12 = scmp.eq.s32.totalorder %s1219_s12, 2 }
  0x25   : > { %s1266_s22 = scalar_select %p34_p6, %s1136_s29, %s36_s9  }
  0x26   : > { %p1268_p10 = por %p44_p8, %p43_p7  ;;  %p1274_p11 = por %p50_p1, %p49_p9 }
  0x27   : > { %1430 = sst [smem:[#allocation21_spill]] %s1266_s22  ;;  %p231_p13 = scmp.eq.s32.totalorder %s757_s21, 2 }
  0x28   : > { %p830_p0 = scmp.lt.s32.totalorder %s1140_s30, 3  ;;  %s1281_s26 = sand.u32 1, %s1136_s29  }
  0x29   : > { %p1283_p2 = por %p225_p12, %p43_p7  ;;  %p1287_p4 = por %p231_p13, %p49_p9 }
  0x2a   : > { %s764_s16 = sshll.u32 %s1281_s26, 3  ;;  %s765_s17 = sshll.u32 %s1140_s30, 3 }
  0x2b   : > { %s319_s18 = scalar_lea.hbm %s1406_s0, %s765_s17  ;;  %s315_s20 = scalar_lea.vmem [#allocation2], %s764_s16 }
  0x2c   : > { %s323_s21 = sshll.u32 %s315_s20, 4  ;;  %s321_s24 = sshll.u32 %s319_s18, 4  ;;  %s324_s21 = int_to_ptr.vmem [resolvable:$true] %s323_s21  ;;  %s322_s24 = int_to_ptr.hbm [resolvable:$true] %s321_s24 }
  0x2d   : > { %p1298_p5 = pnand %p830_p0, %p1268_p10  ;;  %s338_s4 = scalar_lea.hbm %s1413_s7, %s765_s17 }
  0x2e   : > { %s312_s5 = scalar_lea.sflag [#allocation3], %s1281_s26  ;;  %s1002_s22 = sshra.s32 %s322_s24, 4  ;;  %s1003_s22 = int_to_ptr.hbm [resolvable:$true] %s1002_s22 }
  0x2f   : > { %s1004_s11 = scalar_lea.hbm %s1003_s22, 8  ;;  %p1006_p7 = pneg %p1298_p5 }
  0x30   : > { %p1005_p6 = scmp.ne.s32.totalorder %s1003_s22, %s1004_s11  ;;  %s1009_s18 = scalar_lea.hbm %s1406_s0, 24 }
  0x31   : > { %p1010_p10 = scmp.lt.s32.totalorder %s1003_s22, %s1406_s0  ;;  %p1011_p12 = scmp.lt.s32.totalorder %s1009_s18, %s1004_s11 }
  0x32   : > { %p1007_p8 = pnand %p1006_p7, %p1005_p6 }
  0x33   : > { %p1012_p13 = por %p1011_p12, %p1010_p10 }
  0x34   : > { %p1008_p9 = pneg %p1007_p8 }
  0x36   : > { %p1013_p0 = pnand %p1012_p13, %p1008_p9 }
  0x38   : > { %1016 = shalt.err (!%p1013_p0)
}
  0x39   : > { %818 = dma.hbm_to_vmem [thread:$0]  (!%p1298_p5), %s322_s24, 128, %s324_s21, %s312_s5  }
  0x3a   : > { %s340_s3 = sshll.u32 %s338_s4, 4  ;;  %s334_s17 = scalar_lea.vmem [#allocation11], %s764_s16  ;;  %s341_s3 = int_to_ptr.hbm [resolvable:$true] %s340_s3 }
  0x3b   : > { %s342_s29 = sshll.u32 %s334_s17, 4  ;;  %s331_s25 = scalar_lea.sflag [#allocation12], %s1281_s26  ;;  %s343_s29 = int_to_ptr.vmem [resolvable:$true] %s342_s29 }
  0x3c   : > { %s1032_s15 = sshra.s32 %s341_s3, 4  ;;  %s1039_s18 = scalar_lea.hbm %s1413_s7, 24  ;;  %s1033_s15 = int_to_ptr.hbm [resolvable:$true] %s1032_s15 }
  0x3d   : > { %s1034_s23 = scalar_lea.hbm %s1033_s15, 8  ;;  %p1040_p10 = scmp.lt.s32.totalorder %s1033_s15, %s1413_s7 }
  0x3e   : > { %p1035_p6 = scmp.ne.s32.totalorder %s1033_s15, %s1034_s23  ;;  %p1041_p12 = scmp.lt.s32.totalorder %s1039_s18, %s1034_s23 }
  0x40   : > { %p1037_p8 = pnand %p1035_p6, %p1006_p7  ;;  %p1042_p13 = por %p1041_p12, %p1040_p10 }
  0x42   : > { %p1038_p9 = pneg %p1037_p8 }
  0x44   : > { %p1043_p0 = pnand %p1042_p13, %p1038_p9 }
  0x46   : > { %1046 = shalt.err (!%p1043_p0)
}
  0x47   : > { %821 = dma.hbm_to_vmem [thread:$0]  (!%p1298_p5), %s341_s3, 128, %s343_s29, %s331_s25  }
  0x48   : > { %351 = sbr.rel (%p1224_p3) target bundleno = 546 (0x222), region = 52  ;;  %s1334_s4 = sand.u32 (!%p1224_p3), 1, %s1132_s28  }
  0x49   : > { %s769_s26 = sshll.u32 (!%p1224_p3), %s1334_s4, 3  ;;  %s354_s16 = scalar_lea.sflag (!%p1224_p3), [#allocation3], %s1334_s4 }
  0x4a   : > { %s1338_s21 = scalar_lea.vmem (!%p1224_p3), [#allocation2], %s769_s26 }
  0x4d   : > { %1107 = dma.done.wait (%p1274_p11), %s354_s16, 128  }
  0x4e   : > { %1109 = vsyncadd (%p1274_p11), %s354_s16, 4294967168 }
  0x4f   : > { %1111 = dma.done.wait (%p50_p1), [#allocation6], 4096  }
  0x50   : > { %1113 = vsyncadd (%p50_p1), [#allocation6], 4294963200 }
  0x51   : > { %1115 = dma.done.wait (%p50_p1), [#allocation9], 4112  }
  0x52   : > { %1117 = vsyncadd (%p50_p1), [#allocation9], 4294963184  ;;  %s384_s29 = scalar_lea.sflag [#allocation12], %s1334_s4  ;;  %s1353_s13 = scalar_lea.vmem [#allocation11], %s769_s26 }
  0x53   : > { %1119 = dma.done.wait (%p1274_p11), %s384_s29, 128  }
  0x54   : > { %1121 = vsyncadd (%p1274_p11), %s384_s29, 4294967168  ;;  %v442_v0 = vld [vmem:[#allocation5 + $0x78] sm:$0xff]  ;;  %v441_v1 = vld [vmem:[#allocation5 + $0x70] sm:$0xff]  ;;  %s778_s1 = smul.u32 24, %s1334_s4 }
  0x55   : > { %447 = vmatpush.msra.mxu0 %v442_v0  ;;  %v440_v2 = vld [vmem:[#allocation5 + $0x68] sm:$0xff]  ;;  %v439_v3 = vld [vmem:[#allocation5 + $0x60] sm:$0xff]  ;;  %v483_v4 = vld [vmem:[#allocation7 + $0x78] sm:$0xff]  ;;  %s779_s17 = smul.u32 24, %s1219_s12  ;;  %s610_s12 = scalar_lea.sflag [#allocation4], %s1334_s4 }
  0x56   : > { %v438_v5 = vld [vmem:[#allocation5 + $0x58] sm:$0xff]  ;;  %488 = vmatpush.msra.mxu1 %v483_v4  ;;  %v482_v6 = vld [vmem:[#allocation7 + $0x70] sm:$0xff]  ;;  %v481_v7 = vld [vmem:[#allocation7 + $0x68] sm:$0xff]  ;;  %s1367_s3 = scalar_lea.vmem [#allocation13], %s778_s1 }
  0x57   : > { %448 = vmatpush.msra.mxu0 %v441_v1  ;;  %v437_v8 = vld [vmem:[#allocation5 + $0x50] sm:$0xff]  ;;  %v480_v9 = vld [vmem:[#allocation7 + $0x60] sm:$0xff]  ;;  %v436_v10 = vld [vmem:[#allocation5 + $0x48] sm:$0xff]  ;;  %s621_s22 = scalar_lea.hbm %s1414_s8, %s779_s17  ;;  %s623_s11 = sshll.u32 %s1367_s3, 4  ;;  %s624_s11 = int_to_ptr.vmem [resolvable:$true] %s623_s11 }
  0x58   : > { %489 = vmatpush.msra.mxu1 %v482_v6  ;;  %v479_v11 = vld [vmem:[#allocation7 + $0x58] sm:$0xff]  ;;  %v435_v12 = vld [vmem:[#allocation5 + $0x40] sm:$0xff]  ;;  %v478_v13 = vld [vmem:[#allocation7 + $0x50] sm:$0xff]  ;;  %s625_s18 = sshll.u32 %s621_s22, 4  ;;  %s626_s18 = int_to_ptr.hbm [resolvable:$true] %s625_s18 }
  0x59   : > { %449 = vmatpush.msra.mxu0 %v440_v2  ;;  %v434_v14 = vld [vmem:[#allocation5 + $0x38] sm:$0xff]  ;;  %v477_v15 = vld [vmem:[#allocation7 + $0x48] sm:$0xff]  ;;  %v433_v16 = vld [vmem:[#allocation5 + $0x30] sm:$0xff]  ;;  %s1076_s20 = sshra.s32 %s626_s18, 4  ;;  %s1077_s20 = int_to_ptr.hbm [resolvable:$true] %s1076_s20 }
  0x5a   : > { %490 = vmatpush.msra.mxu1 %v481_v7  ;;  %v476_v17 = vld [vmem:[#allocation7 + $0x40] sm:$0xff]  ;;  %v432_v18 = vld [vmem:[#allocation5 + $0x28] sm:$0xff]  ;;  %v475_v19 = vld [vmem:[#allocation7 + $0x38] sm:$0xff]  ;;  %s1078_s5 = scalar_lea.hbm %s1077_s20, 24  ;;  %p1083_p5 = scmp.lt.s32.totalorder %s1077_s20, %s1414_s8 }
  0x5b   : > { %450 = vmatpush.msra.mxu0 %v439_v3  ;;  %v431_v20 = vld [vmem:[#allocation5 + $0x20] sm:$0xff]  ;;  %v474_v21 = vld [vmem:[#allocation7 + $0x30] sm:$0xff]  ;;  %v430_v22 = vld [vmem:[#allocation5 + $0x18] sm:$0xff]  ;;  %p1079_p1 = scmp.ne.s32.totalorder %s1077_s20, %s1078_s5 }
  0x5c   : > { %491 = vmatpush.msra.mxu1 %v480_v9  ;;  %v473_v23 = vld [vmem:[#allocation7 + $0x28] sm:$0xff]  ;;  %v429_v24 = vld [vmem:[#allocation5 + $0x10] sm:$0xff]  ;;  %v472_v25 = vld [vmem:[#allocation7 + $0x20] sm:$0xff] }
  0x5d   : > { %451 = vmatpush.msra.mxu0 %v438_v5  ;;  %v428_v26 = vld [vmem:[#allocation5 + $0x8] sm:$0xff]  ;;  %v471_v27 = vld [vmem:[#allocation7 + $0x18] sm:$0xff]  ;;  %v427_v28 = vld [vmem:[#allocation5] sm:$0xff]  ;;  %p1080_p3 = pnand %p1079_p1, %p1283_p2 }
  0x5e   : > { %492 = vmatpush.msra.mxu1 %v479_v11  ;;  %v426_v29 = vld [vmem:[%s1338_s21] sm:$0xff]  ;;  %v469_v31 = vld [vmem:[#allocation7 + $0x8] sm:$0xff]  ;;  %v468_v32 = vld [vmem:[#allocation7] sm:$0xff]  ;;  %s1082_s21 = scalar_lea.hbm %s1414_s8, 72 }
  0x5f   : > { %452 = vmatpush.msra.mxu0 %v437_v8  ;;  %v470_v30 = vld [vmem:[#allocation7 + $0x10] sm:$0xff]  ;;  %v540_v34 = vld [vmem:[#allocation10 + $0xf8] sm:$0xff]  ;;  %v537_v35 = vld [vmem:[#allocation10 + $0xe0] sm:$0xff]  ;;  %p1081_p11 = pneg %p1080_p3  ;;  %p1084_p7 = scmp.lt.s32.totalorder %s1082_s21, %s1078_s5 }
  0x60   : > { %493 = vmatpush.msra.mxu1 %v478_v13  ;;  %v539_v33 = vld [vmem:[#allocation10 + $0xf0] sm:$0xff]  ;;  %567 = vmatpush.msra.mxu3 %v540_v34  ;;  %v538_v36 = vld [vmem:[#allocation10 + $0xe8] sm:$0xff]  ;;  %v536_v38 = vld [vmem:[#allocation10 + $0xd8] sm:$0xff] }
  0x61   : > { %453 = vmatpush.msra.mxu0 %v436_v10  ;;  %547 = vmatpush.msra.mxu2 %v539_v33  ;;  %v535_v37 = vld [vmem:[#allocation10 + $0xd0] sm:$0xff]  ;;  %v533_v39 = vld [vmem:[#allocation10 + $0xc0] sm:$0xff]  ;;  %v534_v40 = vld [vmem:[#allocation10 + $0xc8] sm:$0xff]  ;;  %p1085_p6 = por %p1084_p7, %p1083_p5 }
  0x62   : > { %494 = vmatpush.msra.mxu1 %v477_v15  ;;  %568 = vmatpush.msra.mxu3 %v538_v36  ;;  %v531_v41 = vld [vmem:[#allocation10 + $0xb0] sm:$0xff]  ;;  %v532_v42 = vld [vmem:[#allocation10 + $0xb8] sm:$0xff]  ;;  %v529_v43 = vld [vmem:[#allocation10 + $0xa0] sm:$0xff] }
  0x63   : > { %454 = vmatpush.msra.mxu0 %v435_v12  ;;  %548 = vmatpush.msra.mxu2 %v537_v35  ;;  %v530_v44 = vld [vmem:[#allocation10 + $0xa8] sm:$0xff]  ;;  %v527_v45 = vld [vmem:[#allocation10 + $0x90] sm:$0xff]  ;;  %v528_v46 = vld [vmem:[#allocation10 + $0x98] sm:$0xff]  ;;  %p1086_p8 = pnand %p1085_p6, %p1081_p11 }
  0x64   : > { %495 = vmatpush.msra.mxu1 %v476_v17  ;;  %569 = vmatpush.msra.mxu3 %v536_v38  ;;  %v525_v47 = vld [vmem:[#allocation10 + $0x80] sm:$0xff]  ;;  %v526_v48 = vld [vmem:[#allocation10 + $0x88] sm:$0xff]  ;;  %v523_v49 = vld [vmem:[#allocation10 + $0x70] sm:$0xff] }
  0x65   : > { %455 = vmatpush.msra.mxu0 %v434_v14  ;;  %549 = vmatpush.msra.mxu2 %v535_v37  ;;  %v524_v50 = vld [vmem:[#allocation10 + $0x78] sm:$0xff]  ;;  %v521_v51 = vld [vmem:[#allocation10 + $0x60] sm:$0xff]  ;;  %v522_v52 = vld [vmem:[#allocation10 + $0x68] sm:$0xff] }
  0x66   : > { %496 = vmatpush.msra.mxu1 %v475_v19  ;;  %570 = vmatpush.msra.mxu3 %v534_v40  ;;  %v519_v53 = vld [vmem:[#allocation10 + $0x50] sm:$0xff]  ;;  %v520_v54 = vld [vmem:[#allocation10 + $0x58] sm:$0xff]  ;;  %v517_v55 = vld [vmem:[#allocation10 + $0x40] sm:$0xff] }
  0x67   : > { %456 = vmatpush.msra.mxu0 %v433_v16  ;;  %550 = vmatpush.msra.mxu2 %v533_v39  ;;  %v518_v56 = vld [vmem:[#allocation10 + $0x48] sm:$0xff]  ;;  %v515_v57 = vld [vmem:[#allocation10 + $0x30] sm:$0xff]  ;;  %v516_v58 = vld [vmem:[#allocation10 + $0x38] sm:$0xff] }
  0x68   : > { %497 = vmatpush.msra.mxu1 %v474_v21  ;;  %571 = vmatpush.msra.mxu3 %v532_v42  ;;  %v876_v59 = vld [vmem:[%s1408_s2] ss:$0 sm:$0xff]  ;;  %v513_v63 = vld [vmem:[#allocation10 + $0x20] sm:$0xff]  ;;  %v511_v1 = vld [vmem:[#allocation10 + $0x10] sm:$0xff] }
  0x69   : > { %457 = vmatpush.msra.mxu0 %v432_v18  ;;  %551 = vmatpush.msra.mxu2 %v531_v41  ;;  %v514_v0 = vld [vmem:[#allocation10 + $0x28] sm:$0xff]  ;;  %v512_v2 = vld [vmem:[#allocation10 + $0x18] sm:$0xff]  ;;  %v509_v3 = vld [vmem:[#allocation10] sm:$0xff] }
  0x6a   : > { %498 = vmatpush.msra.mxu1 %v473_v23  ;;  %572 = vmatpush.msra.mxu3 %v530_v44  ;;  %v510_v4 = vld [vmem:[#allocation10 + $0x8] sm:$0xff]  ;;  %v877_v5 = vld [vmem:[#allocation8] ss:$0 sm:$0xff] }
  0x6b   : > { %458 = vmatpush.msra.mxu0 %v431_v20  ;;  %552 = vmatpush.msra.mxu2 %v529_v43  ;;  %v541_v9 = vld [vmem:[%s1412_s6] sm:$0x3] }
  0x6c   : > { %499 = vmatpush.msra.mxu1 %v472_v25  ;;  %573 = vmatpush.msra.mxu3 %v528_v46  ;;  %v543_v10 = vperm.slane %v541_v9, 0  ;;  %v544_v11 = vperm.slane %v541_v9, 1 }
  0x6d   : > { %459 = vmatpush.msra.mxu0 %v430_v22  ;;  %553 = vmatpush.msra.mxu2 %v527_v45 }
  0x6e   : > { %500 = vmatpush.msra.mxu1 %v471_v27  ;;  %574 = vmatpush.msra.mxu3 %v526_v48 }
  0x6f   : > { %460 = vmatpush.msra.mxu0 %v429_v24  ;;  %554 = vmatpush.msra.mxu2 %v525_v47 }
  0x70   : > { %501 = vmatpush.msra.mxu1 %v470_v30  ;;  %575 = vmatpush.msra.mxu3 %v524_v50  ;;  %v603_v30 = vld [vmem:[%s1353_s13] sm:$0xff] }
  0x71   : > { %461 = vmatpush.msra.mxu0 %v428_v26  ;;  %555 = vmatpush.msra.mxu2 %v523_v49 }
  0x72   : > { %502 = vmatpush.msra.mxu1 %v469_v31  ;;  %576 = vmatpush.msra.mxu3 %v522_v52 }
  0x73   : > { %462 = vmatpush.msra.mxu0 %v427_v28  ;;  %556 = vmatpush.msra.mxu2 %v521_v51 }
  0x74   : > { %463 = vmatmul.f32.vlgmr.msra.gmra.mxu0 %v426_v29  ;;  %503 = vmatpush.msra.mxu1 %v468_v32 }
  0x75   : > { %557 = vmatpush.msra.mxu2 %v519_v53  ;;  %577 = vmatpush.msra.mxu3 %v520_v54 }
  0x77   : > { %558 = vmatpush.msra.mxu2 %v517_v55  ;;  %578 = vmatpush.msra.mxu3 %v518_v56 }
  0x79   : > { %559 = vmatpush.msra.mxu2 %v515_v57  ;;  %579 = vmatpush.msra.mxu3 %v516_v58 }
  0x7b   : > { %560 = vmatpush.msra.mxu2 %v513_v63  ;;  %580 = vmatpush.msra.mxu3 %v514_v0 }
  0x7d   : > { %561 = vmatpush.msra.mxu2 %v511_v1  ;;  %581 = vmatpush.msra.mxu3 %v512_v2 }
  0x7f   : > { %562 = vmatpush.msra.mxu2 %v509_v3  ;;  %582 = vmatpush.msra.mxu3 %v510_v4 }
  0xf1   : > { %v464_v60 = vpop.f32.mrf.mxu0 }
  0xf2   : > { %v465_v61 = vadd.f32 %v876_v59, %v464_v60 }
  0xf4   : > { %v467_v62 = vmax.f32 %v465_v61, 0.0 }
  0xf6   : > { %504 = vmatmul.f32.vlgmr.msra.gmra.mxu1 %v467_v62 }
 0x173   : > { %v505_v6 = vpop.f32.mrf.mxu1 }
 0x174   : > { %v506_v7 = vadd.f32 %v877_v5, %v505_v6 }
 0x176   : > { %v508_v8 = vmax.f32 %v506_v7, 0.0 }
 0x178   : > { %563 = vmatmul.f32.vlgmr.msra.gmra.mxu2 %v508_v8  ;;  %583 = vmatmul.f32.vlgmr.msra.gmra.mxu3 %v508_v8 }
 0x1fb   : > { %v564_v12 = vpop.f32.mrf.mxu2  ;;  %v584_v13 = vpop.f32.mrf.mxu3 }
 0x1fc   : > { %v565_v14 = vadd.f32 %v564_v12, %v543_v10  ;;  %v585_v15 = vadd.f32 %v584_v13, %v544_v11 }
 0x1fe   : > { %606 = vst [vmem:[%s1367_s3 + $0x8] sm:$0xff] %v565_v14  ;;  %v588_v16 = vand.u32 2147483647, %v585_v15  ;;  %v587_v27 = vmax.f32 %v585_v15, 0.0 }
 0x1ff   : > { %607 = vst [vmem:[%s1367_s3 + $0x10] sm:$0xff] %v585_v15 }
 0x200   : > { %v589_v17 = vsub.f32 0.0, %v588_v16 }
 0x202   : > { %v590_v18 = vmul.f32 1.442695, %v589_v17 }
 0x204   : > { %878 = vpow2.f32 %v590_v18 }
 0x20a   : > { %v879_v19 = vpop.eup %878 }
 0x20b   : > { %v592_v20 = vadd.f32 1.0, %v879_v19  ;;  %v595_v21 = vmul.f32 -0.5, %v879_v19  ;;  %v598_v23 = vand.u32 2147483647, %v879_v19 }
 0x20d   : > { %880 = vlog2.f32 %v592_v20  ;;  %v596_v22 = vadd.f32 1.0, %v595_v21  ;;  %vm599_vm0 = vcmp.lt.f32.partialorder %v598_v23, 0.0004427343 }
 0x20f   : > { %v597_v26 = vmul.f32 %v879_v19, %v596_v22 }
 0x213   : > { %v881_v24 = vpop.eup %880 }
 0x214   : > { %v594_v25 = vmul.f32 0.6931472, %v881_v24 }
 0x216   : > { %v600_v28 = vsel %vm599_vm0, %v597_v26, %v594_v25 }
 0x217   : > { %v601_v29 = vadd.f32 %v600_v28, %v587_v27 }
 0x219   : > { %v602_v31 = vadd.f32 1e-06, %v601_v29 }
 0x21b   : > { %v604_v32 = vmul.f32 %v603_v30, %v602_v31 }
 0x21d   : > { %v605_v33 = vadd.f32 %v604_v32, %v565_v14 }
 0x21f   : > { %608 = vst [vmem:[%s1367_s3] sm:$0xff] %v605_v33 }
 0x220   : > { %1089 = shalt.err (!%p1086_p8)
}
 0x221   : > { %800 = dma.vmem_to_hbm [thread:$0]  (%p1283_p2), %s624_s11, 384, %s626_s18, %s610_s12  }
 0x222 PF: > { %p835_p9 = scmp.ge.s32.totalorder %s1140_s30, 2  ;;  %s637_s4 = sand.u32 1, %s1128_s27  }
 0x223   : > { %s638_s23 = scalar_lea.sflag [#allocation4], %s637_s4 }
 0x224   : > { %p823_p10 = pnand %p835_p9, %p1287_p4 }
 0x226   : > { %p824_p12 = pneg %p823_p10 }
 0x228   : > { %1123 = dma.done.wait (%p824_p12), %s638_s23, 384  }
 0x229   : > { %1125 = vsyncadd (%p824_p12), %s638_s23, 4294966912  ;;  %s1436_s30 = sld [smem:[#allocation20_spill]]  ;;  %s1439_s27 = smov %s1132_s28 }
 0x22a   : > { %s1437_s19 = sld [smem:[#allocation19_spill]] }
 0x22b   : > { %s1438_s29 = sld [smem:[#allocation21_spill]] }
 0x22f   : > { %p26_p13 = scmp.ge.s32.totalorder %s1436_s30, 5  }
 0x230   : > { %s1440_s28 = smov %s1437_s19 }
 0x231   :  { %28 = sbr.rel (!%p26_p13) target bundleno = 14 (0xe), region = 126 }
 0x236   :  { %644 = vsyncpa [#allocation3], 1 }
 0x237   :  { %646 = vsyncpa [#allocation3 + $0x1], 1 }
 0x238   :  { %647 = vsyncpa [#allocation6], 1 }
 0x239   :  { %648 = vsyncpa [#allocation9], 1 }
 0x23a   :  { %649 = vsyncpa [#allocation12], 1 }
 0x23b   :  { %651 = vsyncpa [#allocation12 + $0x1], 1 }
 0x23c   :  { %652 = vsyncpa [#allocation4], 1 }
 0x23d   :  { %654 = vsyncpa [#allocation4 + $0x1], 1 }

// kernel: tpu_custom_call.1
= control target key start
LH: loop header
LB: loop body
LE: loop exit
PB: predicated region body
PF: predicated region fallthrough
CT: control target
= control target key end

     0   :  { %s1406_s0 = inlined_call_operand.hbm [shape: f32[24,128], index: 0, kind: input, shape index: {}]   ;;  %s1407_s1 = inlined_call_operand.hbm [shape: f32[128,128], index: 1, kind: input, shape index: {}]   ;;  %s1408_s2 = inlined_call_operand.vmem [shape: f32[1,128], index: 2, kind: input, shape index: {}]   ;;  %s1409_s3 = inlined_call_operand.hbm [shape: f32[128,128], index: 3, kind: input, shape index: {}]   ;;  %s1410_s4 = inlined_call_operand.hbm [shape: f32[1,128], index: 4, kind: input, shape index: {}]   ;;  %s1411_s5 = inlined_call_operand.hbm [shape: f32[128,256], index: 5, kind: input, shape index: {}]   ;;  %s1412_s6 = inlined_call_operand.vmem [shape: f32[1,256], index: 6, kind: input, shape index: {}]   ;;  %s1413_s7 = inlined_call_operand.hbm [shape: f32[24,128], index: 7, kind: input, shape index: {}]   ;;  %s1414_s8 = inlined_call_operand.hbm [shape: f32[24,384], index: 8, kind: output, shape index: {}]  }
   0x1   :  { %1418 = sst [smem:[#allocation22_spill]] %s1407_s1 }
   0x2   :  { %1419 = sst [smem:[#allocation23_spill]] %s1409_s3 }
   0x3   :  { %1420 = sst [smem:[#allocation24_spill]] %s1410_s4 }
   0x4   :  { %1421 = sst [smem:[#allocation25_spill]] %s1411_s5 }
   0x5   :  { %13 = vsyncpa [#allocation3], 0 }
   0x6   :  { %15 = vsyncpa [#allocation3 + $0x1], 0 }
   0x7   :  { %16 = vsyncpa [#allocation6], 0 }
   0x8   :  { %17 = vsyncpa [#allocation9], 0 }
   0x9   :  { %18 = vsyncpa [#allocation12], 0 }
   0xa   :  { %20 = vsyncpa [#allocation12 + $0x1], 0 }
   0xb   :  { %21 = vsyncpa [#allocation4], 0 }
   0xc   :  { %23 = vsyncpa [#allocation4 + $0x1], 0  ;;  %s1195_s27 = smov 0   ;;  %s1197_s28 = smov 0  }
   0xd   :  { %s1199_s29 = smov 0   ;;  %s1201_s30 = smov 0  }
   0xe LB: > { %1422 = sst [smem:[#allocation19_spill]] %s1136_s29  ;;  %s1219_s12 = sadd.s32 4294967295, %s1140_s30   ;;  %s1140_s30 = sphi %s1201_s30, %s1436_s30   ;;  %s1136_s29 = sphi %s1199_s29, %s1438_s29   ;;  %s1132_s28 = sphi %s1197_s28, %s1440_s28   ;;  %s1128_s27 = sphi %s1195_s27, %s1439_s27  }
   0xf   : > { %s1423_s1 = sld [smem:[#allocation22_spill]]  ;;  %p758_p0 = scmp.ge.s32.totalorder %s1140_s30, 1 }
  0x10   : > { %p50_p1 = scmp.eq.s32.totalorder %s1219_s12, 0  ;;  %p238_p2 = scmp.lt.s32.totalorder %s1140_s30, 4 }
  0x11   : > { %s1142_s14 = smov [#allocation5]   ;;  %s1425_s4 = sld [smem:[#allocation24_spill]] }
  0x12   : > { %p1224_p3 = pnand %p758_p0, %p238_p2  ;;  %s251_s15 = sshll.u32 %s1142_s14, 4  ;;  %s252_s15 = int_to_ptr.vmem [resolvable:$true] %s251_s15 }
  0x13   : > { %s1427_s3 = sld [smem:[#allocation23_spill]]  ;;  %s1143_s23 = smov [#allocation8]  }
  0x14   : > { %p802_p4 = pneg %p1224_p3  ;;  %s283_s24 = sshll.u32 %s1143_s23, 4  ;;  %s284_s24 = int_to_ptr.vmem [resolvable:$true] %s283_s24 }
  0x15   : > { %s249_s11 = sshll.u32 %s1423_s1, 4  ;;  %s1144_s25 = smov 128   ;;  %s250_s11 = int_to_ptr.hbm [resolvable:$true] %s249_s11 }
  0x16   : > { %p1235_p5 = pnand %p802_p4, %p50_p1  ;;  %s1145_s26 = smov 8  }
  0x17   : > { %s281_s18 = sshll.u32 %s1425_s4, 4  ;;  %s1428_s5 = sld [smem:[#allocation25_spill]]  ;;  %s282_s18 = int_to_ptr.hbm [resolvable:$true] %s281_s18 }
  0x18   : > { %805 = dma.hbm_to_vmem [thread:$0]  (!%p1235_p5), %s250_s11, 2048, %s252_s15, [#allocation6], %s1144_s25, %s1144_s25, %s1145_s26  }
  0x19   : > { %s266_s22 = sshll.u32 %s1427_s3, 4  ;;  %s1146_s16 = smov [#allocation7]   ;;  %s267_s22 = int_to_ptr.hbm [resolvable:$true] %s266_s22 }
  0x1a   : > { %811 = dma.hbm_to_vmem [thread:$0]  (!%p1235_p5), %s282_s18, 16, %s284_s24, [#allocation9]  }
  0x1b   : > { %s268_s17 = sshll.u32 %s1146_s16, 4  ;;  %s1147_s11 = smov [#allocation10]   ;;  %s269_s17 = int_to_ptr.vmem [resolvable:$true] %s268_s17 }
  0x1c   : > { %808 = dma.hbm_to_vmem [thread:$0]  (!%p1235_p5), %s267_s22, 2048, %s269_s17, [#allocation6], %s1144_s25, %s1144_s25, %s1145_s26  }
  0x1d   : > { %s292_s14 = sshll.u32 %s1428_s5, 4  ;;  %s294_s15 = sshll.u32 %s1147_s11, 4  ;;  %s293_s14 = int_to_ptr.hbm [resolvable:$true] %s292_s14  ;;  %s295_s15 = int_to_ptr.vmem [resolvable:$true] %s294_s15 }
  0x1e   : > { %s1148_s18 = smov 256   ;;  %s1149_s20 = smov 16  }
  0x1f   : > { %814 = dma.hbm_to_vmem [thread:$0]  (!%p1235_p5), %s293_s14, 4096, %s295_s15, [#allocation9], %s1148_s18, %s1148_s18, %s1149_s20  }
  0x20   : > { %s757_s21 = sadd.s32 4294967294, %s1140_s30   ;;  %s1255_s23 = sadd.s32 1, %s1140_s30  }
  0x21   : > { %1429 = sst [smem:[#allocation20_spill]] %s1255_s23  ;;  %s33_s24 = ssub.s32 %s1140_s30, %s1255_s23 }
  0x22   : > { %s36_s9 = sadd.s32 1, %s1136_s29  ;;  %p34_p6 = scmp.eq.s32.totalorder %s33_s24, 0 }
  0x23   : > { %p43_p7 = scmp.ne.s32.totalorder %s1136_s29, %s1132_s28  ;;  %p44_p8 = scmp.eq.s32.totalorder %s1140_s30, 0 }
  0x24   : > { %p49_p9 = scmp.ne.s32.totalorder %s1132_s28, %s1128_s27  ;;  %p225_p12 = scmp.eq.s32.totalorder %s1219_s12, 2 }
  0x25   : > { %s1266_s22 = scalar_select %p34_p6, %s1136_s29, %s36_s9  }
  0x26   : > { %p1268_p10 = por %p44_p8, %p43_p7  ;;  %p1274_p11 = por %p50_p1, %p49_p9 }
  0x27   : > { %1430 = sst [smem:[#allocation21_spill]] %s1266_s22  ;;  %p231_p13 = scmp.eq.s32.totalorder %s757_s21, 2 }
  0x28   : > { %p830_p0 = scmp.lt.s32.totalorder %s1140_s30, 3  ;;  %s1281_s26 = sand.u32 1, %s1136_s29  }
  0x29   : > { %p1283_p2 = por %p225_p12, %p43_p7  ;;  %p1287_p4 = por %p231_p13, %p49_p9 }
  0x2a   : > { %s764_s16 = sshll.u32 %s1281_s26, 3  ;;  %s765_s17 = sshll.u32 %s1140_s30, 3 }
  0x2b   : > { %s319_s18 = scalar_lea.hbm %s1406_s0, %s765_s17  ;;  %s315_s20 = scalar_lea.vmem [#allocation2], %s764_s16 }
  0x2c   : > { %s323_s21 = sshll.u32 %s315_s20, 4  ;;  %s321_s24 = sshll.u32 %s319_s18, 4  ;;  %s324_s21 = int_to_ptr.vmem [resolvable:$true] %s323_s21  ;;  %s322_s24 = int_to_ptr.hbm [resolvable:$true] %s321_s24 }
  0x2d   : > { %p1298_p5 = pnand %p830_p0, %p1268_p10  ;;  %s338_s4 = scalar_lea.hbm %s1413_s7, %s765_s17 }
  0x2e   : > { %s312_s5 = scalar_lea.sflag [#allocation3], %s1281_s26  ;;  %s1002_s22 = sshra.s32 %s322_s24, 4  ;;  %s1003_s22 = int_to_ptr.hbm [resolvable:$true] %s1002_s22 }
  0x2f   : > { %s1004_s11 = scalar_lea.hbm %s1003_s22, 8  ;;  %p1006_p7 = pneg %p1298_p5 }
  0x30   : > { %p1005_p6 = scmp.ne.s32.totalorder %s1003_s22, %s1004_s11  ;;  %s1009_s18 = scalar_lea.hbm %s1406_s0, 24 }
  0x31   : > { %p1010_p10 = scmp.lt.s32.totalorder %s1003_s22, %s1406_s0  ;;  %p1011_p12 = scmp.lt.s32.totalorder %s1009_s18, %s1004_s11 }
  0x32   : > { %p1007_p8 = pnand %p1006_p7, %p1005_p6 }
  0x33   : > { %p1012_p13 = por %p1011_p12, %p1010_p10 }
  0x34   : > { %p1008_p9 = pneg %p1007_p8 }
  0x36   : > { %p1013_p0 = pnand %p1012_p13, %p1008_p9 }
  0x38   : > { %1016 = shalt.err (!%p1013_p0)
}
  0x39   : > { %818 = dma.hbm_to_vmem [thread:$0]  (!%p1298_p5), %s322_s24, 128, %s324_s21, %s312_s5  }
  0x3a   : > { %s340_s3 = sshll.u32 %s338_s4, 4  ;;  %s334_s17 = scalar_lea.vmem [#allocation11], %s764_s16  ;;  %s341_s3 = int_to_ptr.hbm [resolvable:$true] %s340_s3 }
  0x3b   : > { %s342_s29 = sshll.u32 %s334_s17, 4  ;;  %s331_s25 = scalar_lea.sflag [#allocation12], %s1281_s26  ;;  %s343_s29 = int_to_ptr.vmem [resolvable:$true] %s342_s29 }
  0x3c   : > { %s1032_s15 = sshra.s32 %s341_s3, 4  ;;  %s1039_s18 = scalar_lea.hbm %s1413_s7, 24  ;;  %s1033_s15 = int_to_ptr.hbm [resolvable:$true] %s1032_s15 }
  0x3d   : > { %s1034_s23 = scalar_lea.hbm %s1033_s15, 8  ;;  %p1040_p10 = scmp.lt.s32.totalorder %s1033_s15, %s1413_s7 }
  0x3e   : > { %p1035_p6 = scmp.ne.s32.totalorder %s1033_s15, %s1034_s23  ;;  %p1041_p12 = scmp.lt.s32.totalorder %s1039_s18, %s1034_s23 }
  0x40   : > { %p1037_p8 = pnand %p1035_p6, %p1006_p7  ;;  %p1042_p13 = por %p1041_p12, %p1040_p10 }
  0x42   : > { %p1038_p9 = pneg %p1037_p8 }
  0x44   : > { %p1043_p0 = pnand %p1042_p13, %p1038_p9 }
  0x46   : > { %1046 = shalt.err (!%p1043_p0)
}
  0x47   : > { %821 = dma.hbm_to_vmem [thread:$0]  (!%p1298_p5), %s341_s3, 128, %s343_s29, %s331_s25  }
  0x48   : > { %351 = sbr.rel (%p1224_p3) target bundleno = 546 (0x222), region = 52  ;;  %s1334_s4 = sand.u32 (!%p1224_p3), 1, %s1132_s28  }
  0x49   : > { %s769_s26 = sshll.u32 (!%p1224_p3), %s1334_s4, 3  ;;  %s354_s16 = scalar_lea.sflag (!%p1224_p3), [#allocation3], %s1334_s4 }
  0x4a   : > { %s1338_s21 = scalar_lea.vmem (!%p1224_p3), [#allocation2], %s769_s26 }
  0x4d   : > { %1107 = dma.done.wait (%p1274_p11), %s354_s16, 128  }
  0x4e   : > { %1109 = vsyncadd (%p1274_p11), %s354_s16, 4294967168 }
  0x4f   : > { %1111 = dma.done.wait (%p50_p1), [#allocation6], 4096  }
  0x50   : > { %1113 = vsyncadd (%p50_p1), [#allocation6], 4294963200 }
  0x51   : > { %1115 = dma.done.wait (%p50_p1), [#allocation9], 4112  }
  0x52   : > { %1117 = vsyncadd (%p50_p1), [#allocation9], 4294963184  ;;  %s384_s29 = scalar_lea.sflag [#allocation12], %s1334_s4  ;;  %s1353_s13 = scalar_lea.vmem [#allocation11], %s769_s26 }
  0x53   : > { %1119 = dma.done.wait (%p1274_p11), %s384_s29, 128  }
  0x54   : > { %1121 = vsyncadd (%p1274_p11), %s384_s29, 4294967168  ;;  %v442_v0 = vld [vmem:[#allocation5 + $0x78] sm:$0xff]  ;;  %v441_v1 = vld [vmem:[#allocation5 + $0x70] sm:$0xff]  ;;  %s778_s1 = smul.u32 24, %s1334_s4 }
  0x55   : > { %447 = vmatpush.msra.mxu0 %v442_v0  ;;  %v440_v2 = vld [vmem:[#allocation5 + $0x68] sm:$0xff]  ;;  %v439_v3 = vld [vmem:[#allocation5 + $0x60] sm:$0xff]  ;;  %v483_v4 = vld [vmem:[#allocation7 + $0x78] sm:$0xff]  ;;  %s779_s17 = smul.u32 24, %s1219_s12  ;;  %s610_s12 = scalar_lea.sflag [#allocation4], %s1334_s4 }
  0x56   : > { %v438_v5 = vld [vmem:[#allocation5 + $0x58] sm:$0xff]  ;;  %488 = vmatpush.msra.mxu1 %v483_v4  ;;  %v482_v6 = vld [vmem:[#allocation7 + $0x70] sm:$0xff]  ;;  %v481_v7 = vld [vmem:[#allocation7 + $0x68] sm:$0xff]  ;;  %s1367_s3 = scalar_lea.vmem [#allocation13], %s778_s1 }
  0x57   : > { %448 = vmatpush.msra.mxu0 %v441_v1  ;;  %v437_v8 = vld [vmem:[#allocation5 + $0x50] sm:$0xff]  ;;  %v480_v9 = vld [vmem:[#allocation7 + $0x60] sm:$0xff]  ;;  %v436_v10 = vld [vmem:[#allocation5 + $0x48] sm:$0xff]  ;;  %s621_s22 = scalar_lea.hbm %s1414_s8, %s779_s17  ;;  %s623_s11 = sshll.u32 %s1367_s3, 4  ;;  %s624_s11 = int_to_ptr.vmem [resolvable:$true] %s623_s11 }
  0x58   : > { %489 = vmatpush.msra.mxu1 %v482_v6  ;;  %v479_v11 = vld [vmem:[#allocation7 + $0x58] sm:$0xff]  ;;  %v435_v12 = vld [vmem:[#allocation5 + $0x40] sm:$0xff]  ;;  %v478_v13 = vld [vmem:[#allocation7 + $0x50] sm:$0xff]  ;;  %s625_s18 = sshll.u32 %s621_s22, 4  ;;  %s626_s18 = int_to_ptr.hbm [resolvable:$true] %s625_s18 }
  0x59   : > { %449 = vmatpush.msra.mxu0 %v440_v2  ;;  %v434_v14 = vld [vmem:[#allocation5 + $0x38] sm:$0xff]  ;;  %v477_v15 = vld [vmem:[#allocation7 + $0x48] sm:$0xff]  ;;  %v433_v16 = vld [vmem:[#allocation5 + $0x30] sm:$0xff]  ;;  %s1076_s20 = sshra.s32 %s626_s18, 4  ;;  %s1077_s20 = int_to_ptr.hbm [resolvable:$true] %s1076_s20 }
  0x5a   : > { %490 = vmatpush.msra.mxu1 %v481_v7  ;;  %v476_v17 = vld [vmem:[#allocation7 + $0x40] sm:$0xff]  ;;  %v432_v18 = vld [vmem:[#allocation5 + $0x28] sm:$0xff]  ;;  %v475_v19 = vld [vmem:[#allocation7 + $0x38] sm:$0xff]  ;;  %s1078_s5 = scalar_lea.hbm %s1077_s20, 24  ;;  %p1083_p5 = scmp.lt.s32.totalorder %s1077_s20, %s1414_s8 }
  0x5b   : > { %450 = vmatpush.msra.mxu0 %v439_v3  ;;  %v431_v20 = vld [vmem:[#allocation5 + $0x20] sm:$0xff]  ;;  %v474_v21 = vld [vmem:[#allocation7 + $0x30] sm:$0xff]  ;;  %v430_v22 = vld [vmem:[#allocation5 + $0x18] sm:$0xff]  ;;  %p1079_p1 = scmp.ne.s32.totalorder %s1077_s20, %s1078_s5 }
  0x5c   : > { %491 = vmatpush.msra.mxu1 %v480_v9  ;;  %v473_v23 = vld [vmem:[#allocation7 + $0x28] sm:$0xff]  ;;  %v429_v24 = vld [vmem:[#allocation5 + $0x10] sm:$0xff]  ;;  %v472_v25 = vld [vmem:[#allocation7 + $0x20] sm:$0xff] }
  0x5d   : > { %451 = vmatpush.msra.mxu0 %v438_v5  ;;  %v428_v26 = vld [vmem:[#allocation5 + $0x8] sm:$0xff]  ;;  %v471_v27 = vld [vmem:[#allocation7 + $0x18] sm:$0xff]  ;;  %v427_v28 = vld [vmem:[#allocation5] sm:$0xff]  ;;  %p1080_p3 = pnand %p1079_p1, %p1283_p2 }
  0x5e   : > { %492 = vmatpush.msra.mxu1 %v479_v11  ;;  %v426_v29 = vld [vmem:[%s1338_s21] sm:$0xff]  ;;  %v469_v31 = vld [vmem:[#allocation7 + $0x8] sm:$0xff]  ;;  %v468_v32 = vld [vmem:[#allocation7] sm:$0xff]  ;;  %s1082_s21 = scalar_lea.hbm %s1414_s8, 72 }
  0x5f   : > { %452 = vmatpush.msra.mxu0 %v437_v8  ;;  %v470_v30 = vld [vmem:[#allocation7 + $0x10] sm:$0xff]  ;;  %v540_v34 = vld [vmem:[#allocation10 + $0xf8] sm:$0xff]  ;;  %v537_v35 = vld [vmem:[#allocation10 + $0xe0] sm:$0xff]  ;;  %p1081_p11 = pneg %p1080_p3  ;;  %p1084_p7 = scmp.lt.s32.totalorder %s1082_s21, %s1078_s5 }
  0x60   : > { %493 = vmatpush.msra.mxu1 %v478_v13  ;;  %v539_v33 = vld [vmem:[#allocation10 + $0xf0] sm:$0xff]  ;;  %567 = vmatpush.msra.mxu3 %v540_v34  ;;  %v538_v36 = vld [vmem:[#allocation10 + $0xe8] sm:$0xff]  ;;  %v536_v38 = vld [vmem:[#allocation10 + $0xd8] sm:$0xff] }
  0x61   : > { %453 = vmatpush.msra.mxu0 %v436_v10  ;;  %547 = vmatpush.msra.mxu2 %v539_v33  ;;  %v535_v37 = vld [vmem:[#allocation10 + $0xd0] sm:$0xff]  ;;  %v533_v39 = vld [vmem:[#allocation10 + $0xc0] sm:$0xff]  ;;  %v534_v40 = vld [vmem:[#allocation10 + $0xc8] sm:$0xff]  ;;  %p1085_p6 = por %p1084_p7, %p1083_p5 }
  0x62   : > { %494 = vmatpush.msra.mxu1 %v477_v15  ;;  %568 = vmatpush.msra.mxu3 %v538_v36  ;;  %v531_v41 = vld [vmem:[#allocation10 + $0xb0] sm:$0xff]  ;;  %v532_v42 = vld [vmem:[#allocation10 + $0xb8] sm:$0xff]  ;;  %v529_v43 = vld [vmem:[#allocation10 + $0xa0] sm:$0xff] }
  0x63   : > { %454 = vmatpush.msra.mxu0 %v435_v12  ;;  %548 = vmatpush.msra.mxu2 %v537_v35  ;;  %v530_v44 = vld [vmem:[#allocation10 + $0xa8] sm:$0xff]  ;;  %v527_v45 = vld [vmem:[#allocation10 + $0x90] sm:$0xff]  ;;  %v528_v46 = vld [vmem:[#allocation10 + $0x98] sm:$0xff]  ;;  %p1086_p8 = pnand %p1085_p6, %p1081_p11 }
  0x64   : > { %495 = vmatpush.msra.mxu1 %v476_v17  ;;  %569 = vmatpush.msra.mxu3 %v536_v38  ;;  %v525_v47 = vld [vmem:[#allocation10 + $0x80] sm:$0xff]  ;;  %v526_v48 = vld [vmem:[#allocation10 + $0x88] sm:$0xff]  ;;  %v523_v49 = vld [vmem:[#allocation10 + $0x70] sm:$0xff] }
  0x65   : > { %455 = vmatpush.msra.mxu0 %v434_v14  ;;  %549 = vmatpush.msra.mxu2 %v535_v37  ;;  %v524_v50 = vld [vmem:[#allocation10 + $0x78] sm:$0xff]  ;;  %v521_v51 = vld [vmem:[#allocation10 + $0x60] sm:$0xff]  ;;  %v522_v52 = vld [vmem:[#allocation10 + $0x68] sm:$0xff] }
  0x66   : > { %496 = vmatpush.msra.mxu1 %v475_v19  ;;  %570 = vmatpush.msra.mxu3 %v534_v40  ;;  %v519_v53 = vld [vmem:[#allocation10 + $0x50] sm:$0xff]  ;;  %v520_v54 = vld [vmem:[#allocation10 + $0x58] sm:$0xff]  ;;  %v517_v55 = vld [vmem:[#allocation10 + $0x40] sm:$0xff] }
  0x67   : > { %456 = vmatpush.msra.mxu0 %v433_v16  ;;  %550 = vmatpush.msra.mxu2 %v533_v39  ;;  %v518_v56 = vld [vmem:[#allocation10 + $0x48] sm:$0xff]  ;;  %v515_v57 = vld [vmem:[#allocation10 + $0x30] sm:$0xff]  ;;  %v516_v58 = vld [vmem:[#allocation10 + $0x38] sm:$0xff] }
  0x68   : > { %497 = vmatpush.msra.mxu1 %v474_v21  ;;  %571 = vmatpush.msra.mxu3 %v532_v42  ;;  %v876_v59 = vld [vmem:[%s1408_s2] ss:$0 sm:$0xff]  ;;  %v513_v63 = vld [vmem:[#allocation10 + $0x20] sm:$0xff]  ;;  %v511_v1 = vld [vmem:[#allocation10 + $0x10] sm:$0xff] }
  0x69   : > { %457 = vmatpush.msra.mxu0 %v432_v18  ;;  %551 = vmatpush.msra.mxu2 %v531_v41  ;;  %v514_v0 = vld [vmem:[#allocation10 + $0x28] sm:$0xff]  ;;  %v512_v2 = vld [vmem:[#allocation10 + $0x18] sm:$0xff]  ;;  %v509_v3 = vld [vmem:[#allocation10] sm:$0xff] }
  0x6a   : > { %498 = vmatpush.msra.mxu1 %v473_v23  ;;  %572 = vmatpush.msra.mxu3 %v530_v44  ;;  %v510_v4 = vld [vmem:[#allocation10 + $0x8] sm:$0xff]  ;;  %v877_v5 = vld [vmem:[#allocation8] ss:$0 sm:$0xff] }
  0x6b   : > { %458 = vmatpush.msra.mxu0 %v431_v20  ;;  %552 = vmatpush.msra.mxu2 %v529_v43  ;;  %v541_v9 = vld [vmem:[%s1412_s6] sm:$0x3] }
  0x6c   : > { %499 = vmatpush.msra.mxu1 %v472_v25  ;;  %573 = vmatpush.msra.mxu3 %v528_v46  ;;  %v543_v10 = vperm.slane %v541_v9, 0  ;;  %v544_v11 = vperm.slane %v541_v9, 1 }
  0x6d   : > { %459 = vmatpush.msra.mxu0 %v430_v22  ;;  %553 = vmatpush.msra.mxu2 %v527_v45 }
  0x6e   : > { %500 = vmatpush.msra.mxu1 %v471_v27  ;;  %574 = vmatpush.msra.mxu3 %v526_v48 }
  0x6f   : > { %460 = vmatpush.msra.mxu0 %v429_v24  ;;  %554 = vmatpush.msra.mxu2 %v525_v47 }
  0x70   : > { %501 = vmatpush.msra.mxu1 %v470_v30  ;;  %575 = vmatpush.msra.mxu3 %v524_v50  ;;  %v603_v30 = vld [vmem:[%s1353_s13] sm:$0xff] }
  0x71   : > { %461 = vmatpush.msra.mxu0 %v428_v26  ;;  %555 = vmatpush.msra.mxu2 %v523_v49 }
  0x72   : > { %502 = vmatpush.msra.mxu1 %v469_v31  ;;  %576 = vmatpush.msra.mxu3 %v522_v52 }
  0x73   : > { %462 = vmatpush.msra.mxu0 %v427_v28  ;;  %556 = vmatpush.msra.mxu2 %v521_v51 }
  0x74   : > { %463 = vmatmul.f32.vlgmr.msra.gmra.mxu0 %v426_v29  ;;  %503 = vmatpush.msra.mxu1 %v468_v32 }
  0x75   : > { %557 = vmatpush.msra.mxu2 %v519_v53  ;;  %577 = vmatpush.msra.mxu3 %v520_v54 }
  0x77   : > { %558 = vmatpush.msra.mxu2 %v517_v55  ;;  %578 = vmatpush.msra.mxu3 %v518_v56 }
  0x79   : > { %559 = vmatpush.msra.mxu2 %v515_v57  ;;  %579 = vmatpush.msra.mxu3 %v516_v58 }
  0x7b   : > { %560 = vmatpush.msra.mxu2 %v513_v63  ;;  %580 = vmatpush.msra.mxu3 %v514_v0 }
  0x7d   : > { %561 = vmatpush.msra.mxu2 %v511_v1  ;;  %581 = vmatpush.msra.mxu3 %v512_v2 }
  0x7f   : > { %562 = vmatpush.msra.mxu2 %v509_v3  ;;  %582 = vmatpush.msra.mxu3 %v510_v4 }
  0xf1   : > { %v464_v60 = vpop.f32.mrf.mxu0 }
  0xf2   : > { %v465_v61 = vadd.f32 %v876_v59, %v464_v60 }
  0xf4   : > { %v467_v62 = vmax.f32 %v465_v61, 0.0 }
  0xf6   : > { %504 = vmatmul.f32.vlgmr.msra.gmra.mxu1 %v467_v62 }
 0x173   : > { %v505_v6 = vpop.f32.mrf.mxu1 }
 0x174   : > { %v506_v7 = vadd.f32 %v877_v5, %v505_v6 }
 0x176   : > { %v508_v8 = vmax.f32 %v506_v7, 0.0 }
 0x178   : > { %563 = vmatmul.f32.vlgmr.msra.gmra.mxu2 %v508_v8  ;;  %583 = vmatmul.f32.vlgmr.msra.gmra.mxu3 %v508_v8 }
 0x1fb   : > { %v564_v12 = vpop.f32.mrf.mxu2  ;;  %v584_v13 = vpop.f32.mrf.mxu3 }
 0x1fc   : > { %v565_v14 = vadd.f32 %v564_v12, %v543_v10  ;;  %v585_v15 = vadd.f32 %v584_v13, %v544_v11 }
 0x1fe   : > { %606 = vst [vmem:[%s1367_s3 + $0x8] sm:$0xff] %v565_v14  ;;  %v588_v16 = vand.u32 2147483647, %v585_v15  ;;  %v587_v27 = vmax.f32 %v585_v15, 0.0 }
 0x1ff   : > { %607 = vst [vmem:[%s1367_s3 + $0x10] sm:$0xff] %v585_v15 }
 0x200   : > { %v589_v17 = vsub.f32 0.0, %v588_v16 }
 0x202   : > { %v590_v18 = vmul.f32 1.442695, %v589_v17 }
 0x204   : > { %878 = vpow2.f32 %v590_v18 }
 0x20a   : > { %v879_v19 = vpop.eup %878 }
 0x20b   : > { %v592_v20 = vadd.f32 1.0, %v879_v19  ;;  %v595_v21 = vmul.f32 -0.5, %v879_v19  ;;  %v598_v23 = vand.u32 2147483647, %v879_v19 }
 0x20d   : > { %880 = vlog2.f32 %v592_v20  ;;  %v596_v22 = vadd.f32 1.0, %v595_v21  ;;  %vm599_vm0 = vcmp.lt.f32.partialorder %v598_v23, 0.0004427343 }
 0x20f   : > { %v597_v26 = vmul.f32 %v879_v19, %v596_v22 }
 0x213   : > { %v881_v24 = vpop.eup %880 }
 0x214   : > { %v594_v25 = vmul.f32 0.6931472, %v881_v24 }
 0x216   : > { %v600_v28 = vsel %vm599_vm0, %v597_v26, %v594_v25 }
 0x217   : > { %v601_v29 = vadd.f32 %v600_v28, %v587_v27 }
 0x219   : > { %v602_v31 = vadd.f32 1e-06, %v601_v29 }
 0x21b   : > { %v604_v32 = vmul.f32 %v603_v30, %v602_v31 }
 0x21d   : > { %v605_v33 = vadd.f32 %v604_v32, %v565_v14 }
 0x21f   : > { %608 = vst [vmem:[%s1367_s3] sm:$0xff] %v605_v33 }
 0x220   : > { %1089 = shalt.err (!%p1086_p8)
}
 0x221   : > { %800 = dma.vmem_to_hbm [thread:$0]  (%p1283_p2), %s624_s11, 384, %s626_s18, %s610_s12  }
 0x222 PF: > { %p835_p9 = scmp.ge.s32.totalorder %s1140_s30, 2  ;;  %s637_s4 = sand.u32 1, %s1128_s27  }
 0x223   : > { %s638_s23 = scalar_lea.sflag [#allocation4], %s637_s4 }
 0x224   : > { %p823_p10 = pnand %p835_p9, %p1287_p4 }
 0x226   : > { %p824_p12 = pneg %p823_p10 }
 0x228   : > { %1123 = dma.done.wait (%p824_p12), %s638_s23, 384  }
 0x229   : > { %1125 = vsyncadd (%p824_p12), %s638_s23, 4294966912  ;;  %s1436_s30 = sld [smem:[#allocation20_spill]]  ;;  %s1439_s27 = smov %s1132_s28 }
 0x22a   : > { %s1437_s19 = sld [smem:[#allocation19_spill]] }
 0x22b   : > { %s1438_s29 = sld [smem:[#allocation21_spill]] }
 0x22f   : > { %p26_p13 = scmp.ge.s32.totalorder %s1436_s30, 5  }
 0x230   : > { %s1440_s28 = smov %s1437_s19 }
 0x231   :  { %28 = sbr.rel (!%p26_p13) target bundleno = 14 (0xe), region = 126 }
 0x236   :  { %644 = vsyncpa [#allocation3], 1 }
 0x237   :  { %646 = vsyncpa [#allocation3 + $0x1], 1 }
 0x238   :  { %647 = vsyncpa [#allocation6], 1 }
 0x239   :  { %648 = vsyncpa [#allocation9], 1 }
 0x23a   :  { %649 = vsyncpa [#allocation12], 1 }
 0x23b   :  { %651 = vsyncpa [#allocation12 + $0x1], 1 }
 0x23c   :  { %652 = vsyncpa [#allocation4], 1 }
 0x23d   :  { %654 = vsyncpa [#allocation4 + $0x1], 1 }

</bundles_post_ra>
